<compile_context>
chip_gen: v5e
topology: v5e:2x2
jax: 0.10.0
libtpu: 0.0.40
codegen_flags: <defaults>
</compile_context>

<pallas_src>
import jax
import jax.numpy as jnp
import numpy as np
from jax import lax
from jax.experimental import pallas as pl
from jax.experimental.pallas import tpu as pltpu

_LANE = 128


def _round_up(x, m):
    return (x + m - 1) // m * m


def _make_kernel(S, H, R, R_rep, emit_logp):
    f32, bf16 = jnp.float32, jnp.bfloat16

    def kernel(x_ref, meta_ref, wmd_ref, bmd_ref, wbil_ref, sel_ref,
               wx_ref, wy_ref, bb_ref, tag_ref, *logp_refs):
        tn = x_ref.shape[0]
        nb = tn // S

        # Fused dep/head MLP: one MXU matmul on the single x stream; bf16 cast
        # happens here in VMEM (no pre-cast HBM copy of the activations).
        x = x_ref[...].astype(bf16)
        mh = jnp.dot(x, wmd_ref[...], preferred_element_type=f32) + bmd_ref[...]
        mh = jnp.maximum(mh, 0.0)                       # (tn, 2H) = [deps | heads_all]
        deps = mh[:, :H]
        heads_all = mh[:, H:]

        # In-kernel per-sequence head gather.  Tiles are sequence-aligned, so
        # every token's head row lives in this tile.  Exact one-hot select on
        # the VPU (S is static and small); heads stay f32.
        pos3 = meta_ref[:, 0:1].reshape(nb, S, 1)       # head position in [0, S)
        heads3 = heads_all.reshape(nb, S, H)
        heads = jnp.zeros((nb, S, H), f32)
        # TODO(synk): for large S use a batched one-hot MXU matmul / HW gather
        # instead of this unrolled O(S) select loop.
        for t in range(S):
            heads = heads + jnp.where(pos3 == t, heads3[:, t:t + 1, :], 0.0)
        heads = heads.reshape(tn, H)

        deps_b = deps.astype(bf16)
        heads_b = heads.astype(bf16)

        # Bilinear: one wide lane-aligned MXU matmul (R_rep*H padded to a
        # multiple of 128 when possible), then the per-class segmented reduce
        # as a selector matmul.  prod stays f32; the bf16 hi/lo split keeps the
        # MXU reduction exact to f32 accumulation.
        u = jnp.dot(deps_b, wbil_ref[...], preferred_element_type=f32)  # (tn, R_rep*H)
        prod = u * jnp.tile(heads, (1, R_rep))                          # f32
        p_hi = prod.astype(bf16)
        p_lo = (prod - p_hi.astype(f32)).astype(bf16)
        sel = sel_ref[...]
        bil = (jnp.dot(p_hi, sel, preferred_element_type=f32)
               + jnp.dot(p_lo, sel, preferred_element_type=f32))        # (tn, R)

        scores = (bil + bb_ref[...]
                  + jnp.dot(heads_b, wx_ref[...], preferred_element_type=f32)
                  + jnp.dot(deps_b, wy_ref[...], preferred_element_type=f32))

        m = jnp.max(scores, axis=1, keepdims=True)

        # argmax (first max, matching torch.max / jnp.argmax) + mask, in-kernel:
        # a narrow (tn, 1) int32 store instead of a lane-sparse JAX epilogue.
        lane_idx = lax.broadcasted_iota(jnp.int32, scores.shape, 1).astype(f32)
        neg_best = jnp.max(jnp.where(scores == m, -lane_idx, jnp.float32(-R)),
                           axis=1, keepdims=True)
        tag = (-neg_best).astype(jnp.int32)
        tag_ref[...] = tag * meta_ref[:, 1:2]

        if emit_logp:   # log_softmax only when the loss / caller needs it
            e = jnp.exp(scores - m)
            logp_refs[0][...] = scores - m - jnp.log(
                jnp.sum(e, axis=1, keepdims=True))

    return kernel


def _choose_tile_rows(B, S, D, H, RHp):
    """Rows per tile: a multiple of S (sequence-aligned for the in-kernel head
    gather), sized by a rough live-VMEM estimate, and chosen so the grid has an
    even number (>= 2) of 'parallel' steps for v7x's two TensorCores."""
    # Rough live bytes per row: double-buffered f32 x, MLP output, and the wide
    # f32 bilinear intermediates (u / prod / heads_rep / hi / lo).
    row_bytes = 8 * D + 32 * H + 16 * RHp + 64
    target = max(S, min(8192, (12 << 20) // max(row_bytes, 1)))
    if B < 2:
        return S
    n_tiles = max(2, 2 * (-(-(B * S) // (2 * target))))
    seqs_per_tile = -(-B // n_tiles)
    return seqs_per_tile * S


def rel_labeler_forward(seq_features, head, mask, params, return_logp=True):
    """Pallas implementation of RelLabeler.forward (using batch['head'])."""
    B, S, D = seq_features.shape
    H = params["w_head"].shape[1]
    R = params["w_x"].shape[1]
    N = B * S
    f32, bf16 = jnp.float32, jnp.bfloat16

    # TODO(synk): the in-kernel sequence-local gather assumes S % 8 == 0 (clean
    # sublane regrouping); pad sequences or add a glue-gather fallback otherwise.
    assert S % 8 == 0, "rel_labeler_forward requires seq_len % 8 == 0"

    # Lane padding of the wide bilinear weight to a multiple of 128 (when H
    # divides 128) so the MXU result is vreg-aligned; zero columns contribute 0.
    if _LANE % H == 0:
        R_rep = _round_up(R * H, _LANE) // H
    else:
        R_rep = R
    RHp = R_rep * H

    tn = _choose_tile_rows(B, S, D, H, RHp)
    n_pad = _round_up(N, tn)

    # Activations: a single f32 stream (no wrapper bf16 copy) plus a tiny
    # (N, 2) int32 side-band of [head position within sequence, mask].
    head_abs = jnp.abs(head - 1)                       # (B, S), values in [0, S)
    meta = jnp.stack([head_abs.reshape(N),
                      mask.reshape(N).astype(jnp.int32)], axis=1).astype(jnp.int32)
    x_flat = seq_features.reshape(N, D)
    if n_pad != N:
        x_flat = jnp.pad(x_flat, ((0, n_pad - N), (0, 0)))
        meta = jnp.pad(meta, ((0, n_pad - N), (0, 0)))

    # Resident weights (input-major, i.e. transposed vs. nn.Linear).
    w_md = jnp.concatenate([params["w_dep"], params["w_head"]], axis=1).astype(bf16)
    b_md = jnp.concatenate([params["b_dep"], params["b_head"]]).reshape(1, 2 * H).astype(f32)
    w_bil2 = jnp.transpose(params["w_bil"], (1, 0, 2)).reshape(H, R * H)
    if RHp > R * H:
        w_bil2 = jnp.pad(w_bil2, ((0, 0), (0, RHp - R * H)))
    w_bil2 = w_bil2.astype(bf16)
    sel_np = np.zeros((RHp, R), np.float32)            # block "diagonal" 0/1 reducer
    for r in range(R):
        sel_np[r * H:(r + 1) * H, r] = 1.0
    sel = jnp.asarray(sel_np, dtype=bf16)
    wx = params["w_x"].astype(bf16)
    wy = params["w_y"].astype(bf16)
    bb = params["b_bil"].reshape(1, R).astype(f32)
    weights = (w_md, b_md, w_bil2, sel, wx, wy, bb)

    def resident(a):   # full-array block, constant index -> VMEM-resident, single buffer
        return pl.BlockSpec(a.shape, lambda i: (0, 0), pipeline_mode=pl.Buffered(1))

    out_shape = [jax.ShapeDtypeStruct((n_pad, 1), jnp.int32)]
    out_specs = [pl.BlockSpec((tn, 1), lambda i: (i, 0))]
    if return_logp:
        out_shape.append(jax.ShapeDtypeStruct((n_pad, R), f32))
        out_specs.append(pl.BlockSpec((tn, R), lambda i: (i, 0)))

    # Advisory scheduling hint for XLA around the custom call.
    flops = n_pad * (4 * D * H + 2 * H * RHp + 4 * RHp * R + 4 * H * R + 2 * S * H + 8 * R)
    bytes_accessed = (x_flat.size * x_flat.dtype.itemsize + meta.size * 4
                      + n_pad * (4 + (R * 4 if return_logp else 0))
                      + sum(int(w.size) * w.dtype.itemsize for w in weights))
    cost = pl.CostEstimate(flops=int(flops),
                           transcendentals=int(n_pad * (R + 1)) if return_logp else 0,
                           bytes_accessed=int(bytes_accessed))

    kernel = _make_kernel(S, H, R, R_rep, return_logp)
    outs = pl.pallas_call(
        kernel,
        out_shape=tuple(out_shape),
        grid=(n_pad // tn,),
        in_specs=[pl.BlockSpec((tn, D), lambda i: (i, 0)),   # x tile (f32)
                  pl.BlockSpec((tn, 2), lambda i: (i, 0))]   # [head pos, mask]
                 + [resident(w) for w in weights],
        out_specs=tuple(out_specs),
        compiler_params=pltpu.CompilerParams(dimension_semantics=("parallel",)),
        cost_estimate=cost,
    )(x_flat, meta, *weights)
    if not isinstance(outs, (tuple, list)):
        outs = (outs,)

    tag = outs[0][:N, 0].reshape(B, S)
    if return_logp:
        return head_abs, tag, outs[1][:N]
    return head_abs, tag


def rel_labeler_reference(seq_features, head, mask, params):
    """Pure-JAX reference mirroring the PyTorch forward (bf16 MXU operands,
    f32 accumulation -- the same precision contract as the kernel)."""
    B, S, D = seq_features.shape
    N = B * S
    f32, bf16 = jnp.float32, jnp.bfloat16
    head_abs = jnp.abs(head - 1)
    idx = (head_abs + jnp.arange(B, dtype=head.dtype)[:, None] * S).reshape(N)
    x = seq_features.reshape(N, D).astype(bf16)
    deps = jax.nn.relu(jnp.dot(x, params["w_dep"].astype(bf16),
                               preferred_element_type=f32) + params["b_dep"])
    heads_all = jax.nn.relu(jnp.dot(x, params["w_head"].astype(bf16),
                                    preferred_element_type=f32) + params["b_head"])
    heads = heads_all[idx]
    deps_b = deps.astype(bf16)
    heads_b = heads.astype(bf16)
    bil = jnp.einsum("nh,rhk,nk->nr",
                     deps_b.astype(f32),
                     params["w_bil"].astype(bf16).astype(f32),
                     heads,
                     precision=jax.lax.Precision.HIGHEST)
    scores = (bil + params["b_bil"]
              + jnp.dot(heads_b, params["w_x"].astype(bf16),
                        preferred_element_type=f32)
              + jnp.dot(deps_b, params["w_y"].astype(bf16),
                        preferred_element_type=f32))
    logp = jax.nn.log_softmax(scores, axis=1)
    tag = jnp.argmax(logp, axis=1).astype(jnp.int32).reshape(B, S)
    tag = mask.astype(jnp.int32) * tag
    return head_abs, tag, logp


if __name__ == "__main__":
    # Small shapes consistent with the module: batch=2, seq=8, proj_dims=32,
    # hidden=32, num rel labels=8.
    B, S, D, H, R = 2, 8, 32, 32, 8

    key = jax.random.PRNGKey(0)
    ks = jax.random.split(key, 12)
    scale = 0.1
    params = {
        "w_head": scale * jax.random.normal(ks[0], (D, H), jnp.float32),
        "b_head": scale * jax.random.normal(ks[1], (H,), jnp.float32),
        "w_dep":  scale * jax.random.normal(ks[2], (D, H), jnp.float32),
        "b_dep":  scale * jax.random.normal(ks[3], (H,), jnp.float32),
        "w_bil":  scale * jax.random.normal(ks[4], (R, H, H), jnp.float32),
        "b_bil":  scale * jax.random.normal(ks[5], (R,), jnp.float32),
        "w_x":    scale * jax.random.normal(ks[6], (H, R), jnp.float32),
        "w_y":    scale * jax.random.normal(ks[7], (H, R), jnp.float32),
    }

    seq_features = jax.random.normal(ks[8], (B, S, D), jnp.float32)
    head = jax.random.randint(ks[9], (B, S), 0, S, dtype=jnp.int32)
    mask = (jax.random.uniform(ks[10], (B, S)) > 0.2).astype(jnp.int32)

    head_out, tag_seq, logp = rel_labeler_forward(seq_features, head, mask, params)
    jax.block_until_ready((head_out, tag_seq, logp))

    ref_head, ref_tag, ref_logp = rel_labeler_reference(seq_features, head, mask, params)

    np.testing.assert_array_equal(np.asarray(head_out), np.asarray(ref_head))
    np.testing.assert_array_equal(np.asarray(tag_seq), np.asarray(ref_tag))
    np.testing.assert_allclose(np.asarray(logp), np.asarray(ref_logp),
                               rtol=1e-3, atol=1e-3)

    # Inference-style call: tag only, no log-softmax emission (feedback item 7).
    _, tag_only = rel_labeler_forward(seq_features, head, mask, params,
                                      return_logp=False)
    jax.block_until_ready(tag_only)
    np.testing.assert_array_equal(np.asarray(tag_only), np.asarray(ref_tag))

    print("KERNEL_OK")
</pallas_src>

<mosaic_0001>
module attributes {stable_mosaic.version = 11 : i64} {
  func.func @kernel(%arg0: i32, %arg1: memref<8x32xf32, #tpu.memory_space<vmem>>, %arg2: memref<8x2xi32, #tpu.memory_space<vmem>>, %arg3: memref<32x64xbf16, #tpu.memory_space<vmem>>, %arg4: memref<1x64xf32, #tpu.memory_space<vmem>>, %arg5: memref<32x256xbf16, #tpu.memory_space<vmem>>, %arg6: memref<256x8xbf16, #tpu.memory_space<vmem>>, %arg7: memref<32x8xbf16, #tpu.memory_space<vmem>>, %arg8: memref<32x8xbf16, #tpu.memory_space<vmem>>, %arg9: memref<1x8xf32, #tpu.memory_space<vmem>>, %arg10: memref<8x1xi32, #tpu.memory_space<vmem>>, %arg11: memref<8x8xf32, #tpu.memory_space<vmem>>) attributes {dimension_semantics = [#tpu.dimension_semantics<parallel>], iteration_bounds = array<i64: 2>, scalar_prefetch = 0 : i64, scratch_operands = 0 : i64, tpu.core_type = #tpu.core_type<tc>, window_params = [{transform_indices = @transform_0, window_bounds = array<i64: 8, 32>}, {transform_indices = @transform_1, window_bounds = array<i64: 8, 2>}, {pipeline_mode = #tpu.pipeline_mode<synchronous>, transform_indices = @transform_2, window_bounds = array<i64: 32, 64>}, {pipeline_mode = #tpu.pipeline_mode<synchronous>, transform_indices = @transform_3, window_bounds = array<i64: 1, 64>}, {pipeline_mode = #tpu.pipeline_mode<synchronous>, transform_indices = @transform_4, window_bounds = array<i64: 32, 256>}, {pipeline_mode = #tpu.pipeline_mode<synchronous>, transform_indices = @transform_5, window_bounds = array<i64: 256, 8>}, {pipeline_mode = #tpu.pipeline_mode<synchronous>, transform_indices = @transform_6, window_bounds = array<i64: 32, 8>}, {pipeline_mode = #tpu.pipeline_mode<synchronous>, transform_indices = @transform_7, window_bounds = array<i64: 32, 8>}, {pipeline_mode = #tpu.pipeline_mode<synchronous>, transform_indices = @transform_8, window_bounds = array<i64: 1, 8>}, {transform_indices = @transform_9, window_bounds = array<i64: 8, 1>}, {transform_indices = @transform_10, window_bounds = array<i64: 8, 8>}]} {
    %c0 = arith.constant 0 : index
    %c0_0 = arith.constant 0 : index
    %0 = vector.load %arg1[%c0, %c0_0] : memref<8x32xf32, #tpu.memory_space<vmem>>, vector<8x32xf32>
    %1 = arith.truncf %0 : vector<8x32xf32> to vector<8x32xbf16>
    %c0_1 = arith.constant 0 : index
    %c0_2 = arith.constant 0 : index
    %2 = vector.load %arg3[%c0_1, %c0_2] : memref<32x64xbf16, #tpu.memory_space<vmem>>, vector<32x64xbf16>
    %cst = arith.constant dense<0.000000e+00> : vector<8x64xf32>
    %3 = tpu.matmul %1, %2, %cst {dimension_numbers = #tpu.dot_dimension_numbers<[1], [0], [0], [1], [0, 0, 1, 1], [], []>} : vector<8x32xbf16>, vector<32x64xbf16>, vector<8x64xf32> -> vector<8x64xf32>
    %c0_3 = arith.constant 0 : index
    %c0_4 = arith.constant 0 : index
    %4 = vector.load %arg4[%c0_3, %c0_4] : memref<1x64xf32, #tpu.memory_space<vmem>>, vector<1x64xf32>
    %5 = vector.broadcast %4 : vector<1x64xf32> to vector<8x64xf32>
    %6 = arith.addf %3, %5 : vector<8x64xf32>
    %cst_5 = arith.constant 0.000000e+00 : f32
    %7 = vector.broadcast %cst_5 : f32 to vector<8x64xf32>
    %8 = arith.maximumf %6, %7 : vector<8x64xf32>
    %9 = vector.extract_strided_slice %8 {offsets = [0, 0], sizes = [8, 32], strides = [1, 1]} : vector<8x64xf32> to vector<8x32xf32>
    %10 = vector.extract_strided_slice %8 {offsets = [0, 32], sizes = [8, 32], strides = [1, 1]} : vector<8x64xf32> to vector<8x32xf32>
    %c0_6 = arith.constant 0 : index
    %c0_7 = arith.constant 0 : index
    %11 = vector.load %arg2[%c0_6, %c0_7] : memref<8x2xi32, #tpu.memory_space<vmem>>, vector<8x1xi32>
    %12 = vector.shape_cast %11 : vector<8x1xi32> to vector<1x8x1xi32>
    %13 = vector.shape_cast %10 : vector<8x32xf32> to vector<1x8x32xf32>
    %cst_8 = arith.constant 0.000000e+00 : f32
    %14 = vector.broadcast %cst_8 : f32 to vector<1x8x32xf32>
    %c0_i32 = arith.constant 0 : i32
    %15 = vector.broadcast %c0_i32 : i32 to vector<1x8x1xi32>
    %16 = arith.cmpi eq, %12, %15 : vector<1x8x1xi32>
    %17 = vector.extract_strided_slice %13 {offsets = [0, 0, 0], sizes = [1, 1, 32], strides = [1, 1, 1]} : vector<1x8x32xf32> to vector<1x1x32xf32>
    %cst_9 = arith.constant 0.000000e+00 : f32
    %18 = vector.shape_cast %16 : vector<1x8x1xi1> to vector<1x8x1xi1>
    %19 = vector.broadcast %18 : vector<1x8x1xi1> to vector<1x8x32xi1>
    %20 = vector.shape_cast %17 : vector<1x1x32xf32> to vector<1x1x32xf32>
    %21 = vector.broadcast %20 : vector<1x1x32xf32> to vector<1x8x32xf32>
    %22 = vector.broadcast %cst_9 : f32 to vector<1x8x32xf32>
    %23 = arith.select %19, %21, %22 : vector<1x8x32xi1>, vector<1x8x32xf32>
    %24 = arith.addf %14, %23 : vector<1x8x32xf32>
    %c1_i32 = arith.constant 1 : i32
    %25 = vector.broadcast %c1_i32 : i32 to vector<1x8x1xi32>
    %26 = arith.cmpi eq, %12, %25 : vector<1x8x1xi32>
    %27 = vector.extract_strided_slice %13 {offsets = [0, 1, 0], sizes = [1, 1, 32], strides = [1, 1, 1]} : vector<1x8x32xf32> to vector<1x1x32xf32>
    %cst_10 = arith.constant 0.000000e+00 : f32
    %28 = vector.shape_cast %26 : vector<1x8x1xi1> to vector<1x8x1xi1>
    %29 = vector.broadcast %28 : vector<1x8x1xi1> to vector<1x8x32xi1>
    %30 = vector.shape_cast %27 : vector<1x1x32xf32> to vector<1x1x32xf32>
    %31 = vector.broadcast %30 : vector<1x1x32xf32> to vector<1x8x32xf32>
    %32 = vector.broadcast %cst_10 : f32 to vector<1x8x32xf32>
    %33 = arith.select %29, %31, %32 : vector<1x8x32xi1>, vector<1x8x32xf32>
    %34 = arith.addf %24, %33 : vector<1x8x32xf32>
    %c2_i32 = arith.constant 2 : i32
    %35 = vector.broadcast %c2_i32 : i32 to vector<1x8x1xi32>
    %36 = arith.cmpi eq, %12, %35 : vector<1x8x1xi32>
    %37 = vector.extract_strided_slice %13 {offsets = [0, 2, 0], sizes = [1, 1, 32], strides = [1, 1, 1]} : vector<1x8x32xf32> to vector<1x1x32xf32>
    %cst_11 = arith.constant 0.000000e+00 : f32
    %38 = vector.shape_cast %36 : vector<1x8x1xi1> to vector<1x8x1xi1>
    %39 = vector.broadcast %38 : vector<1x8x1xi1> to vector<1x8x32xi1>
    %40 = vector.shape_cast %37 : vector<1x1x32xf32> to vector<1x1x32xf32>
    %41 = vector.broadcast %40 : vector<1x1x32xf32> to vector<1x8x32xf32>
    %42 = vector.broadcast %cst_11 : f32 to vector<1x8x32xf32>
    %43 = arith.select %39, %41, %42 : vector<1x8x32xi1>, vector<1x8x32xf32>
    %44 = arith.addf %34, %43 : vector<1x8x32xf32>
    %c3_i32 = arith.constant 3 : i32
    %45 = vector.broadcast %c3_i32 : i32 to vector<1x8x1xi32>
    %46 = arith.cmpi eq, %12, %45 : vector<1x8x1xi32>
    %47 = vector.extract_strided_slice %13 {offsets = [0, 3, 0], sizes = [1, 1, 32], strides = [1, 1, 1]} : vector<1x8x32xf32> to vector<1x1x32xf32>
    %cst_12 = arith.constant 0.000000e+00 : f32
    %48 = vector.shape_cast %46 : vector<1x8x1xi1> to vector<1x8x1xi1>
    %49 = vector.broadcast %48 : vector<1x8x1xi1> to vector<1x8x32xi1>
    %50 = vector.shape_cast %47 : vector<1x1x32xf32> to vector<1x1x32xf32>
    %51 = vector.broadcast %50 : vector<1x1x32xf32> to vector<1x8x32xf32>
    %52 = vector.broadcast %cst_12 : f32 to vector<1x8x32xf32>
    %53 = arith.select %49, %51, %52 : vector<1x8x32xi1>, vector<1x8x32xf32>
    %54 = arith.addf %44, %53 : vector<1x8x32xf32>
    %c4_i32 = arith.constant 4 : i32
    %55 = vector.broadcast %c4_i32 : i32 to vector<1x8x1xi32>
    %56 = arith.cmpi eq, %12, %55 : vector<1x8x1xi32>
    %57 = vector.extract_strided_slice %13 {offsets = [0, 4, 0], sizes = [1, 1, 32], strides = [1, 1, 1]} : vector<1x8x32xf32> to vector<1x1x32xf32>
    %cst_13 = arith.constant 0.000000e+00 : f32
    %58 = vector.shape_cast %56 : vector<1x8x1xi1> to vector<1x8x1xi1>
    %59 = vector.broadcast %58 : vector<1x8x1xi1> to vector<1x8x32xi1>
    %60 = vector.shape_cast %57 : vector<1x1x32xf32> to vector<1x1x32xf32>
    %61 = vector.broadcast %60 : vector<1x1x32xf32> to vector<1x8x32xf32>
    %62 = vector.broadcast %cst_13 : f32 to vector<1x8x32xf32>
    %63 = arith.select %59, %61, %62 : vector<1x8x32xi1>, vector<1x8x32xf32>
    %64 = arith.addf %54, %63 : vector<1x8x32xf32>
    %c5_i32 = arith.constant 5 : i32
    %65 = vector.broadcast %c5_i32 : i32 to vector<1x8x1xi32>
    %66 = arith.cmpi eq, %12, %65 : vector<1x8x1xi32>
    %67 = vector.extract_strided_slice %13 {offsets = [0, 5, 0], sizes = [1, 1, 32], strides = [1, 1, 1]} : vector<1x8x32xf32> to vector<1x1x32xf32>
    %cst_14 = arith.constant 0.000000e+00 : f32
    %68 = vector.shape_cast %66 : vector<1x8x1xi1> to vector<1x8x1xi1>
    %69 = vector.broadcast %68 : vector<1x8x1xi1> to vector<1x8x32xi1>
    %70 = vector.shape_cast %67 : vector<1x1x32xf32> to vector<1x1x32xf32>
    %71 = vector.broadcast %70 : vector<1x1x32xf32> to vector<1x8x32xf32>
    %72 = vector.broadcast %cst_14 : f32 to vector<1x8x32xf32>
    %73 = arith.select %69, %71, %72 : vector<1x8x32xi1>, vector<1x8x32xf32>
    %74 = arith.addf %64, %73 : vector<1x8x32xf32>
    %c6_i32 = arith.constant 6 : i32
    %75 = vector.broadcast %c6_i32 : i32 to vector<1x8x1xi32>
    %76 = arith.cmpi eq, %12, %75 : vector<1x8x1xi32>
    %77 = vector.extract_strided_slice %13 {offsets = [0, 6, 0], sizes = [1, 1, 32], strides = [1, 1, 1]} : vector<1x8x32xf32> to vector<1x1x32xf32>
    %cst_15 = arith.constant 0.000000e+00 : f32
    %78 = vector.shape_cast %76 : vector<1x8x1xi1> to vector<1x8x1xi1>
    %79 = vector.broadcast %78 : vector<1x8x1xi1> to vector<1x8x32xi1>
    %80 = vector.shape_cast %77 : vector<1x1x32xf32> to vector<1x1x32xf32>
    %81 = vector.broadcast %80 : vector<1x1x32xf32> to vector<1x8x32xf32>
    %82 = vector.broadcast %cst_15 : f32 to vector<1x8x32xf32>
    %83 = arith.select %79, %81, %82 : vector<1x8x32xi1>, vector<1x8x32xf32>
    %84 = arith.addf %74, %83 : vector<1x8x32xf32>
    %c7_i32 = arith.constant 7 : i32
    %85 = vector.broadcast %c7_i32 : i32 to vector<1x8x1xi32>
    %86 = arith.cmpi eq, %12, %85 : vector<1x8x1xi32>
    %87 = vector.extract_strided_slice %13 {offsets = [0, 7, 0], sizes = [1, 1, 32], strides = [1, 1, 1]} : vector<1x8x32xf32> to vector<1x1x32xf32>
    %cst_16 = arith.constant 0.000000e+00 : f32
    %88 = vector.shape_cast %86 : vector<1x8x1xi1> to vector<1x8x1xi1>
    %89 = vector.broadcast %88 : vector<1x8x1xi1> to vector<1x8x32xi1>
    %90 = vector.shape_cast %87 : vector<1x1x32xf32> to vector<1x1x32xf32>
    %91 = vector.broadcast %90 : vector<1x1x32xf32> to vector<1x8x32xf32>
    %92 = vector.broadcast %cst_16 : f32 to vector<1x8x32xf32>
    %93 = arith.select %89, %91, %92 : vector<1x8x32xi1>, vector<1x8x32xf32>
    %94 = arith.addf %84, %93 : vector<1x8x32xf32>
    %95 = vector.shape_cast %94 : vector<1x8x32xf32> to vector<8x32xf32>
    %96 = arith.truncf %9 : vector<8x32xf32> to vector<8x32xbf16>
    %97 = arith.truncf %95 : vector<8x32xf32> to vector<8x32xbf16>
    %c0_17 = arith.constant 0 : index
    %c0_18 = arith.constant 0 : index
    %98 = vector.load %arg5[%c0_17, %c0_18] : memref<32x256xbf16, #tpu.memory_space<vmem>>, vector<32x256xbf16>
    %cst_19 = arith.constant dense<0.000000e+00> : vector<8x256xf32>
    %99 = tpu.matmul %96, %98, %cst_19 {dimension_numbers = #tpu.dot_dimension_numbers<[1], [0], [0], [1], [0, 0, 1, 1], [], []>} : vector<8x32xbf16>, vector<32x256xbf16>, vector<8x256xf32> -> vector<8x256xf32>
    %100 = tpu.concatenate %95, %95, %95, %95, %95, %95, %95, %95 in 1 : vector<8x32xf32>, vector<8x32xf32>, vector<8x32xf32>, vector<8x32xf32>, vector<8x32xf32>, vector<8x32xf32>, vector<8x32xf32>, vector<8x32xf32> -> vector<8x256xf32>
    %101 = arith.mulf %99, %100 : vector<8x256xf32>
    %102 = arith.truncf %101 : vector<8x256xf32> to vector<8x256xbf16>
    %103 = arith.extf %102 : vector<8x256xbf16> to vector<8x256xf32>
    %104 = arith.subf %101, %103 : vector<8x256xf32>
    %105 = arith.truncf %104 : vector<8x256xf32> to vector<8x256xbf16>
    %c0_20 = arith.constant 0 : index
    %c0_21 = arith.constant 0 : index
    %106 = vector.load %arg6[%c0_20, %c0_21] : memref<256x8xbf16, #tpu.memory_space<vmem>>, vector<256x8xbf16>
    %cst_22 = arith.constant dense<0.000000e+00> : vector<8x8xf32>
    %107 = tpu.matmul %102, %106, %cst_22 {dimension_numbers = #tpu.dot_dimension_numbers<[1], [0], [0], [1], [0, 0, 1, 1], [], []>} : vector<8x256xbf16>, vector<256x8xbf16>, vector<8x8xf32> -> vector<8x8xf32>
    %cst_23 = arith.constant dense<0.000000e+00> : vector<8x8xf32>
    %108 = tpu.matmul %105, %106, %cst_23 {dimension_numbers = #tpu.dot_dimension_numbers<[1], [0], [0], [1], [0, 0, 1, 1], [], []>} : vector<8x256xbf16>, vector<256x8xbf16>, vector<8x8xf32> -> vector<8x8xf32>
    %109 = arith.addf %107, %108 : vector<8x8xf32>
    %c0_24 = arith.constant 0 : index
    %c0_25 = arith.constant 0 : index
    %110 = vector.load %arg9[%c0_24, %c0_25] : memref<1x8xf32, #tpu.memory_space<vmem>>, vector<1x8xf32>
    %111 = vector.broadcast %110 : vector<1x8xf32> to vector<8x8xf32>
    %112 = arith.addf %109, %111 : vector<8x8xf32>
    %c0_26 = arith.constant 0 : index
    %c0_27 = arith.constant 0 : index
    %113 = vector.load %arg7[%c0_26, %c0_27] : memref<32x8xbf16, #tpu.memory_space<vmem>>, vector<32x8xbf16>
    %cst_28 = arith.constant dense<0.000000e+00> : vector<8x8xf32>
    %114 = tpu.matmul %97, %113, %cst_28 {dimension_numbers = #tpu.dot_dimension_numbers<[1], [0], [0], [1], [0, 0, 1, 1], [], []>} : vector<8x32xbf16>, vector<32x8xbf16>, vector<8x8xf32> -> vector<8x8xf32>
    %115 = arith.addf %112, %114 : vector<8x8xf32>
    %c0_29 = arith.constant 0 : index
    %c0_30 = arith.constant 0 : index
    %116 = vector.load %arg8[%c0_29, %c0_30] : memref<32x8xbf16, #tpu.memory_space<vmem>>, vector<32x8xbf16>
    %cst_31 = arith.constant dense<0.000000e+00> : vector<8x8xf32>
    %117 = tpu.matmul %96, %116, %cst_31 {dimension_numbers = #tpu.dot_dimension_numbers<[1], [0], [0], [1], [0, 0, 1, 1], [], []>} : vector<8x32xbf16>, vector<32x8xbf16>, vector<8x8xf32> -> vector<8x8xf32>
    %118 = arith.addf %115, %117 : vector<8x8xf32>
    %cst_32 = arith.constant dense<0xFF800000> : vector<8xf32>
    %119 = vector.multi_reduction <maximumf>, %118, %cst_32 [1] : vector<8x8xf32> to vector<8xf32>
    %120 = vector.shape_cast %119 : vector<8xf32> to vector<8x1xf32>
    %121 = tpu.iota {dimensions = array<i32: 1>} : vector<8x8xi32>
    %122 = arith.sitofp %121 : vector<8x8xi32> to vector<8x8xf32>
    %123 = vector.broadcast %120 : vector<8x1xf32> to vector<8x8xf32>
    %124 = arith.cmpf oeq, %118, %123 : vector<8x8xf32>
    %cst_33 = arith.constant 0.000000e+00 : f32
    %125 = vector.broadcast %cst_33 : f32 to vector<8x8xf32>
    %126 = arith.subf %125, %122 : vector<8x8xf32>
    %cst_34 = arith.constant -8.000000e+00 : f32
    %127 = vector.broadcast %cst_34 : f32 to vector<8x8xf32>
    %128 = arith.select %124, %126, %127 : vector<8x8xi1>, vector<8x8xf32>
    %cst_35 = arith.constant dense<0xFF800000> : vector<8xf32>
    %129 = vector.multi_reduction <maximumf>, %128, %cst_35 [1] : vector<8x8xf32> to vector<8xf32>
    %130 = vector.shape_cast %129 : vector<8xf32> to vector<8x1xf32>
    %cst_36 = arith.constant 0.000000e+00 : f32
    %131 = vector.broadcast %cst_36 : f32 to vector<8x1xf32>
    %132 = arith.subf %131, %130 : vector<8x1xf32>
    %133 = arith.fptosi %132 : vector<8x1xf32> to vector<8x1xi32>
    %c0_37 = arith.constant 0 : index
    %c1 = arith.constant 1 : index
    %134 = vector.load %arg2[%c0_37, %c1] : memref<8x2xi32, #tpu.memory_space<vmem>>, vector<8x1xi32>
    %135 = arith.muli %133, %134 : vector<8x1xi32>
    %c0_38 = arith.constant 0 : index
    %c0_39 = arith.constant 0 : index
    %136 = vector.load %arg10[%c0_38, %c0_39] : memref<8x1xi32, #tpu.memory_space<vmem>>, vector<8x1xi32>
    tpu.vector_store %arg10[%c0_38, %c0_39], %135 {strides = array<i32>} : memref<8x1xi32, #tpu.memory_space<vmem>>, vector<8x1xi32>,
    %137 = vector.broadcast %120 : vector<8x1xf32> to vector<8x8xf32>
    %138 = arith.subf %118, %137 : vector<8x8xf32>
    %139 = math.exp %138 : vector<8x8xf32>
    %140 = vector.broadcast %120 : vector<8x1xf32> to vector<8x8xf32>
    %141 = arith.subf %118, %140 : vector<8x8xf32>
    %cst_40 = arith.constant dense<0.000000e+00> : vector<8xf32>
    %142 = vector.multi_reduction <add>, %139, %cst_40 [1] : vector<8x8xf32> to vector<8xf32>
    %143 = vector.shape_cast %142 : vector<8xf32> to vector<8x1xf32>
    %144 = math.log %143 : vector<8x1xf32>
    %145 = vector.broadcast %144 : vector<8x1xf32> to vector<8x8xf32>
    %146 = arith.subf %141, %145 : vector<8x8xf32>
    %c0_41 = arith.constant 0 : index
    %c0_42 = arith.constant 0 : index
    %147 = vector.load %arg11[%c0_41, %c0_42] : memref<8x8xf32, #tpu.memory_space<vmem>>, vector<8x8xf32>
    tpu.vector_store %arg11[%c0_41, %c0_42], %146 {strides = array<i32>} : memref<8x8xf32, #tpu.memory_space<vmem>>, vector<8x8xf32>,
    return
  }
  func.func @transform_0(%arg0: i32) -> (i32, i32) {
    %c0_i32 = arith.constant 0 : i32
    %c0_i32_0 = arith.constant 0 : i32
    return %arg0, %c0_i32 : i32, i32
  }
  func.func @transform_1(%arg0: i32) -> (i32, i32) {
    %c0_i32 = arith.constant 0 : i32
    %c0_i32_0 = arith.constant 0 : i32
    return %arg0, %c0_i32 : i32, i32
  }
  func.func @transform_2(%arg0: i32) -> (i32, i32) {
    %c0_i32 = arith.constant 0 : i32
    %c0_i32_0 = arith.constant 0 : i32
    %c0_i32_1 = arith.constant 0 : i32
    return %c0_i32, %c0_i32_0 : i32, i32
  }
  func.func @transform_3(%arg0: i32) -> (i32, i32) {
    %c0_i32 = arith.constant 0 : i32
    %c0_i32_0 = arith.constant 0 : i32
    %c0_i32_1 = arith.constant 0 : i32
    return %c0_i32, %c0_i32_0 : i32, i32
  }
  func.func @transform_4(%arg0: i32) -> (i32, i32) {
    %c0_i32 = arith.constant 0 : i32
    %c0_i32_0 = arith.constant 0 : i32
    %c0_i32_1 = arith.constant 0 : i32
    return %c0_i32, %c0_i32_0 : i32, i32
  }
  func.func @transform_5(%arg0: i32) -> (i32, i32) {
    %c0_i32 = arith.constant 0 : i32
    %c0_i32_0 = arith.constant 0 : i32
    %c0_i32_1 = arith.constant 0 : i32
    return %c0_i32, %c0_i32_0 : i32, i32
  }
  func.func @transform_6(%arg0: i32) -> (i32, i32) {
    %c0_i32 = arith.constant 0 : i32
    %c0_i32_0 = arith.constant 0 : i32
    %c0_i32_1 = arith.constant 0 : i32
    return %c0_i32, %c0_i32_0 : i32, i32
  }
  func.func @transform_7(%arg0: i32) -> (i32, i32) {
    %c0_i32 = arith.constant 0 : i32
    %c0_i32_0 = arith.constant 0 : i32
    %c0_i32_1 = arith.constant 0 : i32
    return %c0_i32, %c0_i32_0 : i32, i32
  }
  func.func @transform_8(%arg0: i32) -> (i32, i32) {
    %c0_i32 = arith.constant 0 : i32
    %c0_i32_0 = arith.constant 0 : i32
    %c0_i32_1 = arith.constant 0 : i32
    return %c0_i32, %c0_i32_0 : i32, i32
  }
  func.func @transform_9(%arg0: i32) -> (i32, i32) {
    %c0_i32 = arith.constant 0 : i32
    %c0_i32_0 = arith.constant 0 : i32
    return %arg0, %c0_i32 : i32, i32
  }
  func.func @transform_10(%arg0: i32) -> (i32, i32) {
    %c0_i32 = arith.constant 0 : i32
    %c0_i32_0 = arith.constant 0 : i32
    return %arg0, %c0_i32 : i32, i32
  }
}

</mosaic_0001>

<bundles_post_ra>
// kernel: tpu_custom_call.1
= control target key start
LH: loop header
LB: loop body
LE: loop exit
PB: predicated region body
PF: predicated region fallthrough
CT: control target
= control target key end

     0   :  { %s1201_s13 = smov 0   ;;  %s1360_s0 = inlined_call_operand.vmem [shape: f32[16,32], index: 0, kind: input, shape index: {}]   ;;  %s1361_s1 = inlined_call_operand.vmem [shape: s32[16,2], index: 1, kind: input, shape index: {}]   ;;  %s1362_s2 = inlined_call_operand.vmem [shape: bf16[32,64], index: 2, kind: input, shape index: {}]   ;;  %s1363_s3 = inlined_call_operand.vmem [shape: f32[1,64], index: 3, kind: input, shape index: {}]   ;;  %s1364_s4 = inlined_call_operand.vmem [shape: bf16[32,256], index: 4, kind: input, shape index: {}]   ;;  %s1365_s5 = inlined_call_operand.vmem [shape: bf16[256,8], index: 5, kind: input, shape index: {}]   ;;  %s1366_s6 = inlined_call_operand.vmem [shape: bf16[32,8], index: 6, kind: input, shape index: {}]   ;;  %s1367_s7 = inlined_call_operand.vmem [shape: bf16[32,8], index: 7, kind: input, shape index: {}]   ;;  %s1368_s8 = inlined_call_operand.vmem [shape: f32[1,8], index: 8, kind: input, shape index: {}]   ;;  %s1369_s9 = inlined_call_operand.vmem [shape: s32[16,1], index: 9, kind: output, shape index: {0}]   ;;  %s1370_s10 = inlined_call_operand.vmem [shape: f32[16,8], index: 10, kind: output, shape index: {1}]  }
   0x1 LB: > { %s960_s14 = sadd.s32 4294967295, %s1139_s13   ;;  %p964_p0 = scmp.ge.s32.totalorder %s1139_s13, 1  ;;  %s1139_s13 = sphi %s1201_s13, %s21_s13  }
   0x2   : > { %p323_p1 = scmp.lt.s32.totalorder %s1139_s13, 3 }
   0x4   : > { %p324_p2 = pnand %p964_p0, %p323_p1 }
   0x5   : > { %p367_p3 = scmp.lt.s32.totalorder (!%p324_p2), %s960_s14, 1  ;;  %s1142_s26 = smov (!%p324_p2), 64  }
   0x6   : > { %327 = sbr.rel (%p324_p2) target bundleno = 784 (0x310), region = 56  ;;  %s1143_s27 = smov (!%p324_p2), 32  }
   0x7   : > { %s1144_s28 = smov (!%p324_p2), 96   ;;  %s1145_s16 = smov (!%p324_p2), 127  }
   0xb   : > { %v1081_v0 = vld [vmem:[%s1362_s2 + $0x8] sm:$0xff]  ;;  %v1141_v1 = vmov 0   ;;  %v1080_v2 = vld [vmem:[%s1362_s2] sm:$0xff]  ;;  %s1372_s14 = smov (!%p367_p3, %s960_s14), 1  ;;  %vm406_vm2 = vcmask 261120  }
   0xc   : > { %1125 = vset.pattern.permute.xlu1 %v1141_v1  ;;  %1124 = vset.pattern.permute.xlu0 %v1141_v1  ;;  %s1215_s19 = sshll.u32 %s1372_s14, 3  ;;  %v988_v14 = vld [vmem:[%s1364_s4 + $0x10] sm:$0xf]  ;;  %v1085_v15 = vld [vmem:[%s1364_s4 + $0x14] sm:$0xf0] }
   0xd   : > { %416 = vmatpush.bf16.msra.mxu0 %v1081_v0  ;;  %1126 = vset.pattern.permute.xlu2 %v1141_v1  ;;  %s374_s22 = scalar_lea.vmem %s1361_s1, %s1215_s19  ;;  %s370_s25 = scalar_lea.vmem %s1360_s0, %s1215_s19  ;;  %v989_v16 = vor.u32 %v1085_v15, %v988_v14  ;;  %v1084_v17 = vld [vmem:[%s1364_s4 + $0x14] sm:$0xf]  ;;  %v990_v18 = vld [vmem:[%s1364_s4 + $0x18] sm:$0xf0]  ;;  %v980_v20 = vld [vmem:[%s1364_s4] sm:$0xf] }
   0xe   : > { %v1225_v3 = vld [vmem:[%s374_s22] sm:$0xff]  ;;  %v993_v19 = vor.u32 %v1084_v17, %v990_v18  ;;  %v1083_v21 = vld [vmem:[%s1364_s4 + $0x4] sm:$0xf0]  ;;  %v982_v24 = vld [vmem:[%s1364_s4 + $0x8] sm:$0xf0]  ;;  %s382_s20 = scalar_lea.vmem %s1370_s10, %s1215_s19  ;;  %s378_s23 = scalar_lea.vmem %s1369_s9, %s1215_s19 }
   0xf   : > { %v384_v4 = vld [vmem:[%s370_s25] sm:$0xff]  ;;  %vm443_vm0 = vcmp.eq.s32.totalorder %v1225_v3, 2  ;;  %vm425_vm1 = vcmp.eq.s32.totalorder %v1225_v3, 0  ;;  %vm461_vm3 = vcmp.eq.s32.totalorder %v1225_v3, 4  ;;  %vm452_vm4 = vcmp.eq.s32.totalorder %v1225_v3, 3  ;;  %532 = vmatpush.bf16.msra.mxu1 %v989_v16  ;;  %v1093_v0 = vld [vmem:[%s1365_s5 + $0x38] sm:$0xff] }
  0x10   : > { %v385_v5 = vpack.c.bf16 %v384_v4, %v384_v4  ;;  %v444_v6 = vsel %vm443_vm0, 1, %v1141_v1  ;;  %v426_v7 = vsel %vm425_vm1, 1, %v1141_v1  ;;  %v462_v8 = vsel %vm461_vm3, 1, %v1141_v1  ;;  %545 = vmatpush.bf16.msra.mxu2 %v993_v19  ;;  %v1082_v22 = vld [vmem:[%s1364_s4 + $0x4] sm:$0xf]  ;;  %v1100_v4 = vld [vmem:[%s1365_s5 + $0x70] sm:$0xff]  ;;  %704 = vmatpush.bf16.msra.mxu3 %v1093_v0 }
  0x11   : > { %417 = vmatpush.bf16.msra.mxu0 %v1080_v2  ;;  %446 = vperm.xlu1 %1125, %v444_v6   ;;  %vm434_vm5 = vcmp.eq.s32.totalorder %v1225_v3, 1  ;;  %vm470_vm6 = vcmp.eq.s32.totalorder %v1225_v3, 5  ;;  %v453_v9 = vsel %vm452_vm4, 1, %v1141_v1  ;;  %vm488_vm7 = vcmp.eq.s32.totalorder %v1225_v3, 7  ;;  %v1127_v28 = vld [vmem:[%s1363_s3] ss:$0 sm:$0xff] }
  0x12   : > { %428 = vperm.xlu0 %1124, %v426_v7   ;;  %464 = vperm.xlu2 %1126, %v462_v8   ;;  %v435_v10 = vsel %vm434_vm5, 1, %v1141_v1  ;;  %v471_v11 = vsel %vm470_vm6, 1, %v1141_v1  ;;  %vm479_vm8 = vcmp.eq.s32.totalorder %v1225_v3, 6  ;;  %v489_v12 = vsel %vm488_vm7, 1, %v1141_v1  ;;  %v1092_v2 = vld [vmem:[%s1365_s5 + $0x30] sm:$0xff]  ;;  %v1099_v6 = vld [vmem:[%s1365_s5 + $0x68] sm:$0xff] }
  0x13   : > { %v480_v13 = vsel %vm479_vm8, 1, %v1141_v1  ;;  %v981_v23 = vor.u32 %v1083_v21, %v980_v20  ;;  %v985_v25 = vor.u32 %v1082_v22, %v982_v24  ;;  %v1101_v1 = vld [vmem:[%s1365_s5 + $0x78] sm:$0xff]  ;;  %v1090_v7 = vld [vmem:[%s1365_s5 + $0x20] sm:$0xff]  ;;  %v1095_v14 = vld [vmem:[%s1365_s5 + $0x48] sm:$0xff]  ;;  %vm563_vm1 = vcmask 523264  }
  0x14   : > { %977 = vmatmul.msk.bf16.vlgmr.msra.gmra.mxu0 %vm406_vm2, %v385_v5  ;;  %705 = vmatpush.bf16.msra.mxu3 %v1092_v2  ;;  %v1091_v5 = vld [vmem:[%s1365_s5 + $0x28] sm:$0xff]  ;;  %v1098_v8 = vld [vmem:[%s1365_s5 + $0x60] sm:$0xff]  ;;  %vm565_vm3 = vcmask 785408   ;;  %vm852_vm6 = vcmask 7168  }
  0x15   : > { %533 = vmatpush.bf16.msra.mxu1 %v981_v23  ;;  %546 = vmatpush.bf16.msra.mxu2 %v985_v25  ;;  %v1086_v15 = vld [vmem:[%s1365_s5] sm:$0xff]  ;;  %v1103_v17 = vld [vmem:[%s1366_s6 + $0x8] sm:$0xff] }
  0x16   : > { %717 = vmatpush.bf16.msrb.mxu0 %v1101_v1  ;;  %v1094_v16 = vld [vmem:[%s1365_s5 + $0x40] sm:$0xff]  ;;  %v1105_v18 = vld [vmem:[%s1367_s7 + $0x8] sm:$0xff] }
  0x17   : > { %v1102_v19 = vld [vmem:[%s1366_s6] sm:$0xff] }
  0x18   : > { %706 = vmatpush.bf16.msra.mxu3 %v1091_v5  ;;  %v1104_v20 = vld [vmem:[%s1367_s7] sm:$0xff] }
  0x19   : > { %455 = vperm.xlu1 %1125, %v453_v9   ;;  %737 = vmatpush.bf16.msrb.mxu1 %v1093_v0  ;;  %v1089_v9 = vld [vmem:[%s1365_s5 + $0x18] sm:$0xff] }
  0x1a   : > { %437 = vperm.xlu0 %1124, %v435_v10   ;;  %473 = vperm.xlu2 %1126, %v471_v11   ;;  %v1097_v10 = vld [vmem:[%s1365_s5 + $0x58] sm:$0xff]  ;;  %v1088_v11 = vld [vmem:[%s1365_s5 + $0x10] sm:$0xff] }
  0x1b   : > { %750 = vmatpush.bf16.msrb.mxu2 %v1101_v1  ;;  %718 = vmatpush.bf16.msrb.mxu0 %v1100_v4  ;;  %v838_v1 = vlaneseq }
  0x1c   : > { %707 = vmatpush.bf16.msra.mxu3 %v1090_v7 }
  0x1d   : > { %738 = vmatpush.bf16.msrb.mxu1 %v1092_v2  ;;  %v839_v2 = vand.u32 127, %v838_v1 }
  0x1f   : > { %751 = vmatpush.bf16.msrb.mxu2 %v1100_v4  ;;  %719 = vmatpush.bf16.msrb.mxu0 %v1099_v6  ;;  %v840_v4 = vcvt.s32.f32 %v839_v2 }
  0x20   : > { %708 = vmatpush.bf16.msra.mxu3 %v1089_v9 }
  0x21   : > { %491 = vperm.xlu1 %1125, %v489_v12   ;;  %739 = vmatpush.bf16.msrb.mxu1 %v1091_v5  ;;  %v1096_v12 = vld [vmem:[%s1365_s5 + $0x50] sm:$0xff]  ;;  %v842_v5 = vsub.f32 0.0, %v840_v4 }
  0x22   : > { %482 = vperm.xlu0 %1124, %v480_v13   ;;  %v1087_v13 = vld [vmem:[%s1365_s5 + $0x8] sm:$0xff] }
  0x23   : > { %752 = vmatpush.bf16.msrb.mxu2 %v1099_v6  ;;  %720 = vmatpush.bf16.msrb.mxu0 %v1098_v8 }
  0x24   : > { %709 = vmatpush.bf16.msra.mxu3 %v1088_v11 }
  0x25   : > { %740 = vmatpush.bf16.msrb.mxu1 %v1090_v7 }
  0x27   : > { %753 = vmatpush.bf16.msrb.mxu2 %v1098_v8  ;;  %721 = vmatpush.bf16.msrb.mxu0 %v1097_v10 }
  0x28   : > { %710 = vmatpush.bf16.msra.mxu3 %v1087_v13 }
  0x29   : > { %741 = vmatpush.bf16.msrb.mxu1 %v1089_v9 }
  0x2b   : > { %754 = vmatpush.bf16.msrb.mxu2 %v1097_v10  ;;  %722 = vmatpush.bf16.msrb.mxu0 %v1096_v12 }
  0x2c   : > { %711 = vmatpush.bf16.msra.mxu3 %v1086_v15 }
  0x2d   : > { %742 = vmatpush.bf16.msrb.mxu1 %v1088_v11 }
  0x2f   : > { %755 = vmatpush.bf16.msrb.mxu2 %v1096_v12  ;;  %723 = vmatpush.bf16.msrb.mxu0 %v1095_v14 }
  0x30   : > { %796 = vmatpush.bf16.msrb.mxu3 %v1103_v17 }
  0x31   : > { %743 = vmatpush.bf16.msrb.mxu1 %v1087_v13 }
  0x33   : > { %756 = vmatpush.bf16.msrb.mxu2 %v1095_v14  ;;  %724 = vmatpush.bf16.msrb.mxu0 %v1094_v16 }
  0x34   : > { %797 = vmatpush.bf16.msrb.mxu3 %v1102_v19 }
  0x35   : > { %744 = vmatpush.bf16.msrb.mxu1 %v1086_v15 }
  0x37   : > { %757 = vmatpush.bf16.msrb.mxu2 %v1094_v16  ;;  %826 = vmatpush.bf16.msra.mxu0 %v1105_v18 }
  0x3b   : > { %827 = vmatpush.bf16.msra.mxu0 %v1104_v20 }
  0x6c   : > { %v465_v29 = vpop.permute.xlu2 %464 }
  0x6d   : > { %vm466_vm13 = vcmp.eq.s32.totalorder %v465_v29, 1 }
  0x74   : > { %v474_v44 = vpop.permute.xlu2 %473 }
  0x75   : > { %vm475_vm14 = vcmp.eq.s32.totalorder %v474_v44, 1 }
  0x83   : > { %v447_v27 = vpop.permute.xlu1 %446 }
  0x84   : > { %v429_v26 = vpop.permute.xlu0 %428  ;;  %vm448_vm11 = vcmp.eq.s32.totalorder %v447_v27, 1 }
  0x85   : > { %vm430_vm9 = vcmp.eq.s32.totalorder %v429_v26, 1 }
  0x8b   : > { %v456_v34 = vpop.permute.xlu1 %455 }
  0x8c   : > { %v438_v32 = vpop.permute.xlu0 %437  ;;  %vm457_vm12 = vcmp.eq.s32.totalorder %v456_v34, 1 }
  0x8d   : > { %vm439_vm10 = vcmp.eq.s32.totalorder %v438_v32, 1 }
  0x91   : > { %v419_v30 = vpop.f32.mrf.mxu0 }
  0x92   : > { %v420_v31 = vadd.f32 %v1127_v28, %v419_v30 }
  0x93   : > { %v492_v52 = vpop.permute.xlu1 %491 }
  0x94   : > { %v423_v33 = vmax.f32 %v420_v31, 0.0  ;;  %v483_v48 = vpop.permute.xlu0 %482  ;;  %vm493_vm0 = vcmp.eq.s32.totalorder %v492_v52, 1 }
  0x95   : > { %vm484_vm15 = vcmp.eq.s32.totalorder %v483_v48, 1 }
  0x96   : > { %v431_v35 = vperm.slane %v423_v33, 0  ;;  %v440_v36 = vperm.slane %v423_v33, 1  ;;  %v449_v37 = vperm.slane %v423_v33, 2  ;;  %v458_v40 = vperm.slane %v423_v33, 3 }
  0x97   : > { %v1263_v43 = vpack.c.bf16 %v423_v33, %v423_v33  ;;  %v467_v46 = vperm.slane %v423_v33, 4  ;;  %v476_v50 = vperm.slane %v423_v33, 5  ;;  %v485_v53 = vperm.slane %v423_v33, 6 }
  0x98   : > { %v432_v38 = vsel %vm430_vm9, %v431_v35, 0.0  ;;  %v441_v39 = vsel %vm439_vm10, %v440_v36, 0.0  ;;  %v450_v45 = vsel %vm448_vm11, %v449_v37, 0.0  ;;  %v459_v49 = vsel %vm457_vm12, %v458_v40, 0.0 }
  0x99   : > { %v421_v41 = vpop.f32.mrf.mxu0  ;;  %v442_v42 = vadd.f32 %v441_v39, %v432_v38  ;;  %994 = vmatmul.msk.bf16.vlgmr.msra.gmra.mxu1 %vm406_vm2, %v1263_v43  ;;  %995 = vmatmul.msk.bf16.vlgmr.msra.gmra.mxu2 %vm406_vm2, %v1263_v43  ;;  %v468_v54 = vsel %vm466_vm13, %v467_v46, 0.0  ;;  %v494_v56 = vperm.slane %v423_v33, 7  ;;  %v477_v57 = vsel %vm475_vm14, %v476_v50, 0.0 }
  0x9a   : > { %v486_v59 = vsel %vm484_vm15, %v485_v53, 0.0 }
  0x9b   : > { %v451_v47 = vadd.f32 %v450_v45, %v442_v42  ;;  %v495_v61 = vsel %vm493_vm0, %v494_v56, 0.0 }
  0x9d   : > { %v460_v51 = vadd.f32 %v459_v49, %v451_v47 }
  0x9f   : > { %v469_v55 = vadd.f32 %v468_v54, %v460_v51 }
  0xa1   : > { %v478_v58 = vadd.f32 %v477_v57, %v469_v55 }
  0xa3   : > { %v487_v60 = vadd.f32 %v486_v59, %v478_v58  ;;  %v1128_v58 = vld [vmem:[%s1368_s8] ss:$0 sm:$0xff] }
  0xa5   : > { %v1269_v62 = vadd.f32 %v495_v61, %v487_v60 }
  0xa7   : > { %559 = vrot.lane.b32.xlu1 %v1269_v62, %s1142_s26  ;;  %556 = vrot.lane.b32.xlu0 %v1269_v62, %s1143_s27  ;;  %v498_v63 = vpack.c.bf16 %v1269_v62, %v1269_v62 }
  0xa8   : > { %553 = vrot.lane.b32.xlu2 %v1269_v62, %s1144_s28 }
  0xb0   : > { %773 = vrot.lane.b32.xlu2 %v498_v63, %s1144_s28 }
 0x102   : > { %v554_v21 = vpop.permute.xlu2 %553 }
 0x103   : > { %v562_v23 = vsel %vm406_vm2, %v554_v21, %v1269_v62 }
 0x10a   : > { %v774_v45 = vpop.permute.xlu2 %773 }
 0x116   : > { %v535_v22 = vpop.f32.mrf.mxu1 }
 0x119   : > { %v560_v24 = vpop.permute.xlu1 %559  ;;  %v557_v25 = vpop.permute.xlu0 %556 }
 0x11a   : > { %v564_v26 = vsel %vm563_vm1, %v562_v23, %v557_v25 }
 0x11b   : > { %v566_v27 = vsel %vm565_vm3, %v564_v26, %v560_v24 }
 0x11c   : > { %v567_v28 = vmul.f32 %v566_v27, %v535_v22  ;;  %v548_v29 = vpop.f32.mrf.mxu2 }
 0x11d   : > { %v568_v30 = vmul.f32 %v566_v27, %v548_v29 }
 0x11e   : > { %v537_v31 = vpop.f32.mrf.mxu1 }
 0x11f   : > { %v569_v32 = vpack.c.bf16 %v568_v30, %v567_v28 }
 0x121   : > { %v571_v33 = vunpack.c.h.bf16 %v569_v32  ;;  %v731_v34 = vunpack.c.l.b16 %v569_v32  ;;  %v732_v35 = vunpack.c.h.b16 %v569_v32  ;;  %v570_v36 = vunpack.c.l.bf16 %v569_v32 }
 0x123   : > { %v573_v37 = vsub.f32 %v568_v30, %v571_v33  ;;  %v733_v38 = vpack.c.b16 %v731_v34, %v731_v34  ;;  %v734_v39 = vpack.c.b16 %v732_v35, %v732_v35  ;;  %v572_v40 = vsub.f32 %v567_v28, %v570_v36 }
 0x124   : > { %v550_v41 = vpop.f32.mrf.mxu2 }
 0x125   : > { %v575_v42 = vpack.c.bf16 %v573_v37, %v573_v37  ;;  %745 = vmatmul.bf16.vlgmr.msrb.gmra.mxu1 %v733_v38  ;;  %758 = vmatmul.bf16.vlgmr.msrb.gmra.mxu2 %v734_v39  ;;  %v574_v44 = vpack.c.bf16 %v572_v40, %v572_v40 }
 0x127   : > { %712 = vmatmul.bf16.vlgmr.msra.gmra.mxu3 %v574_v44  ;;  %725 = vmatmul.bf16.vlgmr.msrb.gmra.mxu0 %v575_v42 }
 0x137   : > { %1068 = vmatmul.msk.bf16.vlgmr.msrb.gmra.mxu3 %vm406_vm2, %v774_v45  ;;  %1077 = vmatmul.msk.bf16.vlgmr.msra.gmra.mxu0 %vm406_vm2, %v1263_v43  ;;  %vm834_vm2 = vcmask 64512  }
 0x1a2   : > { %v746_v46 = vpop.f32.mrf.mxu1 }
 0x1a4   : > { %v726_v47 = vpop.f32.mrf.mxu0 }
 0x1a8   : > { %v759_v48 = vpop.f32.mrf.mxu2 }
 0x1aa   : > { %v713_v49 = vpop.f32.mrf.mxu3  ;;  %v748_v50 = vpop.f32.mrf.mxu1 }
 0x1ab   : > { %v727_v52 = vadd.f32 %v726_v47, %v713_v49 }
 0x1ac   : > { %v728_v51 = vpop.f32.mrf.mxu0 }
 0x1ad   : > { %v747_v54 = vadd.f32 %v746_v46, %v727_v52 }
 0x1af   : > { %v760_v57 = vadd.f32 %v759_v48, %v747_v54 }
 0x1b0   : > { %v761_v53 = vpop.f32.mrf.mxu2 }
 0x1b1   : > { %v767_v59 = vadd.f32 %v1128_v58, %v760_v57 }
 0x1b2   : > { %v715_v55 = vpop.f32.mrf.mxu3 }
 0x1b4   : > { %v829_v56 = vpop.f32.mrf.mxu0 }
 0x1ba   : > { %v799_v60 = vpop.f32.mrf.mxu3 }
 0x1bb   : > { %v803_v61 = vadd.f32 %v799_v60, %v767_v59 }
 0x1bc   : > { %v831_v43 = vpop.f32.mrf.mxu0 }
 0x1bd   : > { %v833_v62 = vadd.f32 %v829_v56, %v803_v61 }
 0x1bf   : > { %v835_v63 = vsel %vm834_vm2, %v833_v62, -inf }
 0x1c0   : > { %836 = vmax.xlane.f32.xlu0 %v835_v63 }
 0x1c2   : > { %v801_v0 = vpop.f32.mrf.mxu3 }
 0x233   : > { %v837_v6 = vpop.xlane.xlu0 %836 }
 0x234   : > { %vm841_vm4 = vcmp.eq.f32.partialorder %v833_v62, %v837_v6  ;;  %v854_v7 = vsub.f32 %v833_v62, %v837_v6 }
 0x235   : > { %v843_v8 = vsel %vm841_vm4, %v842_v5, -8.0 }
 0x236   : > { %v855_v9 = vmul.f32 1.442695, %v854_v7  ;;  %v844_v10 = vsel %vm834_vm2, %v843_v8, -inf }
 0x237   : > { %845 = vmax.xlane.f32.xlu1 %v844_v10 }
 0x238   : > { %1129 = vpow2.f32 %v855_v9 }
 0x23e   : > { %v1130_v11 = vpop.eup %1129 }
 0x23f   : > { %v857_v12 = vsel %vm834_vm2, %v1130_v11, 0.0 }
 0x240   : > { %858 = vadd.xlane.f32.xlu2 %v857_v12 }
 0x2aa   : > { %v846_v13 = vpop.xlane.xlu1 %845 }
 0x2ab   : > { %v847_v14 = vsub.f32 0.0, %v846_v13 }
 0x2ad   : > { %vm1106_vm5 = vcmp.lt.s32.totalorder %v847_v14, 0  ;;  %v1107_v15 = vceil.f32 %v847_v14  ;;  %v1108_v16 = vfloor.f32 %v847_v14 }
 0x2af   : > { %v1109_v17 = vsel %vm1106_vm5, %v1107_v15, %v1108_v16 }
 0x2b0   : > { %v1110_v18 = vcvt.f32.s32 %v1109_v17 }
 0x2b2   : > { %v849_v19 = vmul.u32 %v1110_v18, %v1225_v3 }
 0x2b3   : > { %v859_v20 = vpop.xlane.xlu2 %858 }
 0x2b4   : > { %1131 = vlog2.f32 %v859_v20  ;;  %850 = vrot.lane.b32.xlu2 %v849_v19, %s1145_s16 }
 0x2ba   : > { %v1132_v21 = vpop.eup %1131 }
 0x2bb   : > { %v861_v22 = vmul.f32 0.6931472, %v1132_v21 }
 0x2bd   : > { %v862_v23 = vsub.f32 %v854_v7, %v861_v22 }
 0x2bf   : > { %863 = vst.msk [vmem:[%s382_s20] sm:$0xff] %vm834_vm2, %v862_v23 }
 0x30e   : > { %v851_v24 = vpop.permute.xlu2 %850 }
 0x30f   : > { %853 = vst.msk [vmem:[%s378_s23] sm:$0xff] %vm852_vm6, %v851_v24 }
 0x310 PF: > { %s21_s13 = sadd.s32 1, %s1139_s13  }
 0x311   : > { %p18_p4 = scmp.ge.s32.totalorder %s21_s13, 4  }
 0x313   :  { %20 = sbr.rel (!%p18_p4) target bundleno = 1 (0x1), region = 101 }

</bundles_post_ra>
